<compile_context>
chip_gen: v6e
topology: v6e:2x2x1
jax: 0.10.0
libtpu: 0.0.40
codegen_flags: <defaults>
</compile_context>

<pallas_src>
import numpy as np
import jax
import jax.numpy as jnp
from jax.experimental import pallas as pl
from jax.experimental.pallas import tpu as pltpu

_MIB = 1024 * 1024


def _round_up(x, m):
    return (x + m - 1) // m * m


def _vmem_limit_bytes():
    """Per-generation VMEM limit: ~75% of physical, capped at 96 MiB.

    v5e/v6e (128 MiB physical) -> 96 MiB; v7x (64 MiB per TC) -> 48 MiB;
    conservative 48 MiB fallback if the query is unavailable.
    """
    try:
        cap = int(pltpu.get_tpu_info().vmem_capacity_bytes)
    except Exception:
        cap = 0
    if cap <= 0:
        cap = 64 * _MIB
    return int(min(cap * 3 // 4, 96 * _MIB))


# ----------------------------------------------------------------------------
# Stage 1: fused backbone conv (im2col matmul) + ReLU + fused decoder|aux heads
# ----------------------------------------------------------------------------
def _backbone_heads_kernel(p_ref, wbb_ref, bbb_ref, whd_ref, bhd_ref, o_ref):
    # p:(bm,Kp) bf16   wbb:(Kp,Hp) bf16   bbb:(1,Hp) f32
    # whd:(Hp,C) bf16  bhd:(1,C)  f32  ->  o:(bm,C) bf16
    feat = jnp.dot(p_ref[...], wbb_ref[...], preferred_element_type=jnp.float32)
    feat = jnp.maximum(feat + bbb_ref[...], 0.0)          # bias + ReLU in f32 (VPU)
    out = jnp.dot(feat.astype(jnp.bfloat16), whd_ref[...],
                  preferred_element_type=jnp.float32)
    o_ref[...] = (out + bhd_ref[...]).astype(o_ref.dtype)


def _pick_block_m(m, kp, hp, c, budget_bytes):
    # Per-row VMEM cost: double-buffered patches + outputs, plus the in-kernel
    # f32/bf16 `feat` intermediates (counted against the budget per review).
    per_row = (2 * kp * 2) + (2 * c * 2) + (hp * 4 + hp * 2) + (c * 4)
    bm = max(budget_bytes // per_row, 8)
    bm = min(bm, 4096)                          # per-step overhead amortized by here
    if m > 16:                                  # keep >=2 grid steps for megacore
        bm = min(bm, _round_up(pl.cdiv(m, 2), 8))
    bm = max((bm // 8) * 8, 8)
    return int(min(bm, _round_up(m, 8)))


def backbone_and_heads(patches2d, w_bb, b_bb, w_heads, b_heads, *, vmem_limit):
    m, kp = patches2d.shape
    hp = w_bb.shape[1]
    c = w_heads.shape[1]
    bm = _pick_block_m(m, kp, hp, c, budget_bytes=vmem_limit // 2)
    m_pad = _round_up(m, bm)
    if m_pad != m:
        patches2d = jnp.pad(patches2d, ((0, m_pad - m), (0, 0)))
    weight_bytes = kp * hp * 2 + hp * 4 + hp * c * 2 + c * 4
    cost = pl.CostEstimate(
        flops=2 * m_pad * (kp * hp + hp * c),
        transcendentals=0,
        bytes_accessed=m_pad * kp * 2 + m_pad * c * 2 + weight_bytes,
    )
    out = pl.pallas_call(
        _backbone_heads_kernel,
        out_shape=jax.ShapeDtypeStruct((m_pad, c), jnp.bfloat16),
        grid=(m_pad // bm,),
        in_specs=[
            pl.BlockSpec((bm, kp), lambda i: (i, 0)),
            pl.BlockSpec((kp, hp), lambda i: (0, 0)),
            pl.BlockSpec((1, hp), lambda i: (0, 0)),
            pl.BlockSpec((hp, c), lambda i: (0, 0)),
            pl.BlockSpec((1, c), lambda i: (0, 0)),
        ],
        out_specs=pl.BlockSpec((bm, c), lambda i: (i, 0)),
        compiler_params=pltpu.CompilerParams(
            dimension_semantics=("parallel",),
            vmem_limit_bytes=vmem_limit,
        ),
        cost_estimate=cost,
    )(patches2d, w_bb, b_bb, w_heads, b_heads)
    return out[:m] if m_pad != m else out


# ----------------------------------------------------------------------------
# Stage 2: fused separable bilinear upsample of both heads, NCHW lane-dense out
# ----------------------------------------------------------------------------
def _make_upsample_kernel(num_classes, aux_classes, bh):
    c_total = num_classes + aux_classes

    def kernel(wh_ref, wwt_ref, z_hbm, log_ref, aux_ref, z_vmem):
        b = pl.program_id(0)

        # z is constant along the H-tile axis: copy it once per batch into a
        # single (not double-buffered) VMEM scratch (halves z's footprint).
        @pl.when(pl.program_id(1) == 0)
        def _():
            pltpu.sync_copy(z_hbm.at[b], z_vmem)

        wh = wh_ref[...]                                    # (bh, h) bf16
        # Row (H) pass, per channel: (bh, h) @ (h, w) -> (bh, w), f32 accumulate.
        rows = [
            jnp.dot(wh, z_vmem[c], preferred_element_type=jnp.float32)
            for c in range(c_total)
        ]
        # Column (W) pass: one channel-stacked wide MXU matmul
        # (C*bh, w) @ (w, Wpad) -- keeps wwt resident and fills the MXU lanes.
        t = jnp.concatenate(rows, axis=0).astype(jnp.bfloat16)   # (C*bh, w)
        u = jnp.dot(t, wwt_ref[...], preferred_element_type=jnp.float32)
        # Lane-dense (Wpad multiple of 128) NCHW stores, per channel.
        for c in range(num_classes):
            log_ref[0, c] = u[c * bh:(c + 1) * bh, :].astype(log_ref.dtype)
        for c in range(aux_classes):
            cc = num_classes + c
            aux_ref[0, c] = u[cc * bh:(cc + 1) * bh, :].astype(aux_ref.dtype)

    return kernel


def _pick_block_h(h_out, h_feat, w_feat, w_pad, c_total, budget_bytes):
    fixed = c_total * h_feat * w_feat * 2           # z_vmem (bf16, single buffer)
    fixed += 2 * w_feat * w_pad * 2                 # wwt blocks (double-buffered)
    per_bh = 2 * h_feat * 2                         # wh blocks
    per_bh += 2 * c_total * w_pad * 4               # logits+aux out blocks (x2 bufs)
    per_bh += c_total * (w_feat * 4 + w_feat * 2)   # row-pass intermediate f32+bf16
    per_bh += c_total * w_pad * 4                   # column-pass result (f32)
    avail = max(budget_bytes - fixed, per_bh * 8)
    bh = max(avail // per_bh, 8)
    bh = max((min(bh, _round_up(h_out, 8)) // 8) * 8, 8)
    return int(bh)


def upsample_heads(z_nchw, wh, wwt, num_classes, aux_classes, *, vmem_limit):
    n, c_total, h, w = z_nchw.shape
    h_out = wh.shape[0]
    w_out = wwt.shape[1]
    w_pad = _round_up(w_out, 128)                    # lane-dense stores
    bh = _pick_block_h(h_out, h, w, w_pad, c_total,
                       budget_bytes=int(vmem_limit * 0.8))
    h_pad = _round_up(h_out, bh)
    # Zero-padded interp matrices: padded output rows/cols compute zeros that
    # get sliced off in XLA (only when padding was actually needed).
    wh_p = jnp.pad(wh, ((0, h_pad - h_out), (0, 0))).astype(jnp.bfloat16)
    wwt_p = jnp.pad(wwt, ((0, 0), (0, w_pad - w_out))).astype(jnp.bfloat16)
    cost = pl.CostEstimate(
        flops=2 * n * c_total * (h_pad * h * w + h_pad * w * w_pad),
        transcendentals=0,
        bytes_accessed=(n * c_total * h * w * 2
                        + n * c_total * h_pad * w_pad * 4
                        + h_pad * h * 2 + w * w_pad * 2),
    )
    logits, aux = pl.pallas_call(
        _make_upsample_kernel(num_classes, aux_classes, bh),
        out_shape=(jax.ShapeDtypeStruct((n, num_classes, h_pad, w_pad), jnp.float32),
                   jax.ShapeDtypeStruct((n, aux_classes, h_pad, w_pad), jnp.float32)),
        grid=(n, h_pad // bh),
        in_specs=[
            pl.BlockSpec((bh, h), lambda b, hb: (hb, 0)),
            pl.BlockSpec((w, w_pad), lambda b, hb: (0, 0)),
            pl.BlockSpec(memory_space=pl.ANY),       # z: manual single-buffer copy
        ],
        out_specs=(
            pl.BlockSpec((1, num_classes, bh, w_pad), lambda b, hb: (b, 0, hb, 0)),
            pl.BlockSpec((1, aux_classes, bh, w_pad), lambda b, hb: (b, 0, hb, 0)),
        ),
        scratch_shapes=[pltpu.VMEM((c_total, h, w), jnp.bfloat16)],
        compiler_params=pltpu.CompilerParams(
            # batch axis is megacore-parallel; H-tile axis stays "arbitrary" so
            # the per-batch z copy (guarded on hb == 0) always executes.
            dimension_semantics=("parallel", "arbitrary"),
            vmem_limit_bytes=vmem_limit,
        ),
        cost_estimate=cost,
    )(wh_p, wwt_p, z_nchw)
    if h_pad != h_out or w_pad != w_out:
        logits = logits[:, :, :h_out, :w_out]
        aux = aux[:, :, :h_out, :w_out]
    return logits, aux


# ----------------------------------------------------------------------------
# Glue: im2col, bilinear interpolation matrices, parameter init
# ----------------------------------------------------------------------------
def im2col_3x3_s2_p1(x_nhwc):
    """(N,H,W,Cin) -> (N,h,w,9*Cin) for conv3x3 stride2 pad1; h=(H-1)//2+1."""
    n, h_in, w_in, cin = x_nhwc.shape
    h_out = (h_in - 1) // 2 + 1
    w_out = (w_in - 1) // 2 + 1
    xp = jnp.pad(x_nhwc, ((0, 0), (1, 1), (1, 1), (0, 0)))
    cols = []
    for ki in range(3):
        for kj in range(3):
            cols.append(xp[:, ki:ki + 2 * h_out - 1:2, kj:kj + 2 * w_out - 1:2, :])
    return jnp.concatenate(cols, axis=-1), h_out, w_out


def bilinear_matrix(out_size, in_size):
    """Interp matrix matching F.interpolate(mode='bilinear', align_corners=False)."""
    scale = in_size / out_size
    dst = np.arange(out_size, dtype=np.float64)
    src = np.maximum((dst + 0.5) * scale - 0.5, 0.0)
    i0 = np.minimum(np.floor(src).astype(np.int64), in_size - 1)
    i1 = np.minimum(i0 + 1, in_size - 1)
    w1 = src - i0
    m = np.zeros((out_size, in_size), dtype=np.float32)
    m[np.arange(out_size), i0] += (1.0 - w1).astype(np.float32)
    m[np.arange(out_size), i1] += w1.astype(np.float32)
    return jnp.asarray(m)


def init_params(key, cin, hidden, num_classes, aux_classes):
    k1, k2, k3 = jax.random.split(key, 3)
    return {
        # backbone 3x3 conv, im2col row order (ki, kj, cin)
        "w_bb": jax.random.normal(k1, (9 * cin, hidden), jnp.float32) * 0.1,
        "b_bb": jnp.zeros((hidden,), jnp.float32),
        "w_dec": jax.random.normal(k2, (hidden, num_classes), jnp.float32) * 0.1,
        "b_dec": jnp.zeros((num_classes,), jnp.float32),
        "w_aux": jax.random.normal(k3, (hidden, aux_classes), jnp.float32) * 0.1,
        "b_aux": jnp.zeros((aux_classes,), jnp.float32),
    }


# ----------------------------------------------------------------------------
# Forward pass (segmentor.forward)
# ----------------------------------------------------------------------------
@jax.jit
def segmentor_forward(x_nchw, params):
    n, cin, h_in, w_in = x_nchw.shape
    hidden = params["w_bb"].shape[1]
    num_classes = params["w_dec"].shape[1]
    aux_classes = params["w_aux"].shape[1]
    vmem_limit = _vmem_limit_bytes()

    # NHWC, bf16 *before* im2col so the XLA-side patch tensor is half-width.
    x = jnp.transpose(x_nchw, (0, 2, 3, 1)).astype(jnp.bfloat16)

    # TODO(synk): fold this im2col into the Stage-1 kernel (halo-row DMAs + 9
    # accumulated MXU passes) to remove the remaining ~2.25x activation traffic.
    patches, h, w = im2col_3x3_s2_p1(x)
    m = n * h * w
    k = 9 * cin

    # Lane-align contraction dims (full-width MXU passes).
    k_pad = _round_up(k, 128)
    h_pad = _round_up(hidden, 128)

    patches2d = patches.reshape(m, k)
    if k_pad != k:
        patches2d = jnp.pad(patches2d, ((0, 0), (0, k_pad - k)))

    w_bb = jnp.pad(params["w_bb"],
                   ((0, k_pad - k), (0, h_pad - hidden))).astype(jnp.bfloat16)
    b_bb = jnp.pad(params["b_bb"], (0, h_pad - hidden)).reshape(1, h_pad)
    # fused decoder|aux heads: one (hidden_pad, num_classes+aux_classes) matmul
    w_heads = jnp.pad(jnp.concatenate([params["w_dec"], params["w_aux"]], axis=1),
                      ((0, h_pad - hidden), (0, 0))).astype(jnp.bfloat16)
    b_heads = jnp.concatenate([params["b_dec"], params["b_aux"]]).reshape(1, -1)

    # Stage 1: backbone + both heads fused (features never leave VMEM).
    z2d = backbone_and_heads(patches2d, w_bb, b_bb, w_heads, b_heads,
                             vmem_limit=vmem_limit)          # (M, C) bf16
    c_heads = num_classes + aux_classes
    # Small feature-resolution relayout to NCHW so Stage 2 writes channel-major,
    # lane-dense (W on lanes) full-resolution outputs directly.
    z = z2d.reshape(n, h, w, c_heads).transpose(0, 3, 1, 2)  # (N, C, h, w)

    # Interpolation matrices (align_corners=False); static-shape constants.
    wh = bilinear_matrix(h_in, h)                            # (H, h) f32
    wwt = bilinear_matrix(w_in, w).T                         # (w, W) f32

    # Stage 2: fused separable bilinear upsample, NCHW lane-dense outputs.
    return upsample_heads(z, wh, wwt, num_classes, aux_classes,
                          vmem_limit=vmem_limit)


# ----------------------------------------------------------------------------
# Pure-JAX f32 reference (for tolerance validation of the bf16 kernel policy)
# ----------------------------------------------------------------------------
def segmentor_reference(x_nchw, params):
    n, cin, h_in, w_in = x_nchw.shape
    hidden = params["w_bb"].shape[1]
    x = jnp.transpose(x_nchw, (0, 2, 3, 1)).astype(jnp.float32)      # NHWC
    w_conv = params["w_bb"].reshape(3, 3, cin, hidden)               # HWIO
    feat = jax.lax.conv_general_dilated(
        x, w_conv, window_strides=(2, 2), padding=((1, 1), (1, 1)),
        dimension_numbers=("NHWC", "HWIO", "NHWC"))
    feat = jnp.maximum(feat + params["b_bb"], 0.0)                   # (n,h,w,hid)
    logits = feat @ params["w_dec"] + params["b_dec"]
    aux = feat @ params["w_aux"] + params["b_aux"]
    logits = jnp.transpose(logits, (0, 3, 1, 2))
    aux = jnp.transpose(aux, (0, 3, 1, 2))
    h, w = feat.shape[1], feat.shape[2]
    wh = bilinear_matrix(h_in, h)
    ww = bilinear_matrix(w_in, w)
    up = lambda t: jnp.einsum("Hh,nchw,Ww->ncHW", wh, t, ww)
    return up(logits), up(aux)


# ----------------------------------------------------------------------------
if __name__ == "__main__":
    N, CIN, H, W = 2, 4, 16, 16
    HIDDEN, NUM_CLASSES, AUX_CLASSES = 32, 4, 4

    key = jax.random.PRNGKey(0)
    kx, kp = jax.random.split(key)
    x = jax.random.normal(kx, (N, CIN, H, W), jnp.float32)
    params = init_params(kp, CIN, HIDDEN, NUM_CLASSES, AUX_CLASSES)

    logits, aux = segmentor_forward(x, params)
    jax.block_until_ready((logits, aux))

    assert logits.shape == (N, NUM_CLASSES, H, W)
    assert aux.shape == (N, AUX_CLASSES, H, W)
    assert bool(jnp.all(jnp.isfinite(logits))) and bool(jnp.all(jnp.isfinite(aux)))

    # Validate against an f32 reference (bf16 MXU policy -> loose tolerance).
    ref_logits, ref_aux = segmentor_reference(x, params)
    err = max(float(jnp.max(jnp.abs(logits - ref_logits))),
              float(jnp.max(jnp.abs(aux - ref_aux))))
    assert err < 8e-2, f"max abs error vs f32 reference: {err}"

    print("KERNEL_OK")
</pallas_src>

<mosaic_0001>
module attributes {stable_mosaic.version = 11 : i64} {
  func.func @_backbone_heads_kernel(%arg0: i32, %arg1: memref<64x128xbf16, #tpu.memory_space<vmem>>, %arg2: memref<128x128xbf16, #tpu.memory_space<vmem>>, %arg3: memref<1x128xf32, #tpu.memory_space<vmem>>, %arg4: memref<128x8xbf16, #tpu.memory_space<vmem>>, %arg5: memref<1x8xf32, #tpu.memory_space<vmem>>, %arg6: memref<64x8xbf16, #tpu.memory_space<vmem>>) attributes {dimension_semantics = [#tpu.dimension_semantics<parallel>], iteration_bounds = array<i64: 2>, scalar_prefetch = 0 : i64, scratch_operands = 0 : i64, tpu.core_type = #tpu.core_type<tc>, window_params = [{transform_indices = @transform_0, window_bounds = array<i64: 64, 128>}, {pipeline_mode = #tpu.pipeline_mode<synchronous>, transform_indices = @transform_1, window_bounds = array<i64: 128, 128>}, {pipeline_mode = #tpu.pipeline_mode<synchronous>, transform_indices = @transform_2, window_bounds = array<i64: 1, 128>}, {pipeline_mode = #tpu.pipeline_mode<synchronous>, transform_indices = @transform_3, window_bounds = array<i64: 128, 8>}, {pipeline_mode = #tpu.pipeline_mode<synchronous>, transform_indices = @transform_4, window_bounds = array<i64: 1, 8>}, {transform_indices = @transform_5, window_bounds = array<i64: 64, 8>}]} {
    %c0 = arith.constant 0 : index
    %c0_0 = arith.constant 0 : index
    %0 = vector.load %arg1[%c0, %c0_0] : memref<64x128xbf16, #tpu.memory_space<vmem>>, vector<64x128xbf16>
    %c0_1 = arith.constant 0 : index
    %c0_2 = arith.constant 0 : index
    %1 = vector.load %arg2[%c0_1, %c0_2] : memref<128x128xbf16, #tpu.memory_space<vmem>>, vector<128x128xbf16>
    %cst = arith.constant dense<0.000000e+00> : vector<64x128xf32>
    %2 = tpu.matmul %0, %1, %cst {dimension_numbers = #tpu.dot_dimension_numbers<[1], [0], [0], [1], [0, 0, 1, 1], [], []>} : vector<64x128xbf16>, vector<128x128xbf16>, vector<64x128xf32> -> vector<64x128xf32>
    %c0_3 = arith.constant 0 : index
    %c0_4 = arith.constant 0 : index
    %3 = vector.load %arg3[%c0_3, %c0_4] : memref<1x128xf32, #tpu.memory_space<vmem>>, vector<1x128xf32>
    %4 = vector.broadcast %3 : vector<1x128xf32> to vector<64x128xf32>
    %5 = arith.addf %2, %4 : vector<64x128xf32>
    %cst_5 = arith.constant 0.000000e+00 : f32
    %6 = vector.broadcast %cst_5 : f32 to vector<64x128xf32>
    %7 = arith.maximumf %5, %6 : vector<64x128xf32>
    %8 = arith.truncf %7 : vector<64x128xf32> to vector<64x128xbf16>
    %c0_6 = arith.constant 0 : index
    %c0_7 = arith.constant 0 : index
    %9 = vector.load %arg4[%c0_6, %c0_7] : memref<128x8xbf16, #tpu.memory_space<vmem>>, vector<128x8xbf16>
    %cst_8 = arith.constant dense<0.000000e+00> : vector<64x8xf32>
    %10 = tpu.matmul %8, %9, %cst_8 {dimension_numbers = #tpu.dot_dimension_numbers<[1], [0], [0], [1], [0, 0, 1, 1], [], []>} : vector<64x128xbf16>, vector<128x8xbf16>, vector<64x8xf32> -> vector<64x8xf32>
    %c0_9 = arith.constant 0 : index
    %c0_10 = arith.constant 0 : index
    %11 = vector.load %arg5[%c0_9, %c0_10] : memref<1x8xf32, #tpu.memory_space<vmem>>, vector<1x8xf32>
    %12 = vector.broadcast %11 : vector<1x8xf32> to vector<64x8xf32>
    %13 = arith.addf %10, %12 : vector<64x8xf32>
    %14 = arith.truncf %13 : vector<64x8xf32> to vector<64x8xbf16>
    %c0_11 = arith.constant 0 : index
    %c0_12 = arith.constant 0 : index
    %15 = vector.load %arg6[%c0_11, %c0_12] : memref<64x8xbf16, #tpu.memory_space<vmem>>, vector<64x8xbf16>
    tpu.vector_store %arg6[%c0_11, %c0_12], %14 {strides = array<i32>} : memref<64x8xbf16, #tpu.memory_space<vmem>>, vector<64x8xbf16>,
    return
  }
  func.func @transform_0(%arg0: i32) -> (i32, i32) {
    %c0_i32 = arith.constant 0 : i32
    %c0_i32_0 = arith.constant 0 : i32
    return %arg0, %c0_i32 : i32, i32
  }
  func.func @transform_1(%arg0: i32) -> (i32, i32) {
    %c0_i32 = arith.constant 0 : i32
    %c0_i32_0 = arith.constant 0 : i32
    %c0_i32_1 = arith.constant 0 : i32
    return %c0_i32, %c0_i32_0 : i32, i32
  }
  func.func @transform_2(%arg0: i32) -> (i32, i32) {
    %c0_i32 = arith.constant 0 : i32
    %c0_i32_0 = arith.constant 0 : i32
    %c0_i32_1 = arith.constant 0 : i32
    return %c0_i32, %c0_i32_0 : i32, i32
  }
  func.func @transform_3(%arg0: i32) -> (i32, i32) {
    %c0_i32 = arith.constant 0 : i32
    %c0_i32_0 = arith.constant 0 : i32
    %c0_i32_1 = arith.constant 0 : i32
    return %c0_i32, %c0_i32_0 : i32, i32
  }
  func.func @transform_4(%arg0: i32) -> (i32, i32) {
    %c0_i32 = arith.constant 0 : i32
    %c0_i32_0 = arith.constant 0 : i32
    %c0_i32_1 = arith.constant 0 : i32
    return %c0_i32, %c0_i32_0 : i32, i32
  }
  func.func @transform_5(%arg0: i32) -> (i32, i32) {
    %c0_i32 = arith.constant 0 : i32
    %c0_i32_0 = arith.constant 0 : i32
    return %arg0, %c0_i32 : i32, i32
  }
}

module attributes {stable_mosaic.version = 11 : i64} {
  func.func @kernel(%arg0: i32, %arg1: i32, %arg2: memref<16x8xbf16, #tpu.memory_space<vmem>>, %arg3: memref<8x128xbf16, #tpu.memory_space<vmem>>, %arg4: memref<2x8x8x8xbf16, #tpu.memory_space<any>>, %arg5: memref<1x4x16x128xf32, #tpu.memory_space<vmem>>, %arg6: memref<1x4x16x128xf32, #tpu.memory_space<vmem>>, %arg7: memref<8x8x8xbf16, #tpu.memory_space<vmem>>) attributes {dimension_semantics = [#tpu.dimension_semantics<parallel>, #tpu.dimension_semantics<arbitrary>], iteration_bounds = array<i64: 2, 1>, scalar_prefetch = 0 : i64, scratch_operands = 1 : i64, tpu.core_type = #tpu.core_type<tc>, window_params = [{transform_indices = @transform_0, window_bounds = array<i64: 16, 8>}, {pipeline_mode = #tpu.pipeline_mode<synchronous>, transform_indices = @transform_1, window_bounds = array<i64: 8, 128>}, {}, {transform_indices = @transform_3, window_bounds = array<i64: 1, 4, 16, 128>}, {transform_indices = @transform_4, window_bounds = array<i64: 1, 4, 16, 128>}]} {
    %c0_i32 = arith.constant 0 : i32
    %0 = arith.cmpi eq, %arg1, %c0_i32 : i32
    %1 = arith.extui %0 : i1 to i32
    %c0_i32_0 = arith.constant 0 : i32
    %2 = arith.cmpi ne, %1, %c0_i32_0 : i32
    scf.if %2 {
      "tpu.region"() ({
        %64 = tpu.sem_alloc : memref<!tpu.dma_semaphore, #tpu.memory_space<semaphore_mem>>
        %c0_i32_61 = arith.constant 0 : i32
        %c0_i32_62 = arith.constant 0 : i32
        %c0_i32_63 = arith.constant 0 : i32
        %65 = tpu.memref_slice %arg4[%arg0, %c0_i32_61, %c0_i32_62, %c0_i32_63] : memref<2x8x8x8xbf16, #tpu.memory_space<any>> -> memref<1x8x8x8xbf16, #tpu.memory_space<any>>
        %66 = tpu.memref_squeeze %65 : memref<1x8x8x8xbf16, #tpu.memory_space<any>> -> memref<8x8x8xbf16, #tpu.memory_space<any>>
        tpu.enqueue_dma source(%66 : memref<8x8x8xbf16, #tpu.memory_space<any>>) target(%arg7 : memref<8x8x8xbf16, #tpu.memory_space<vmem>>) target_semaphore(%64 : memref<!tpu.dma_semaphore, #tpu.memory_space<semaphore_mem>>)
        %c0_i32_64 = arith.constant 0 : i32
        %c0_i32_65 = arith.constant 0 : i32
        %c0_i32_66 = arith.constant 0 : i32
        %67 = tpu.memref_slice %arg4[%arg0, %c0_i32_64, %c0_i32_65, %c0_i32_66] : memref<2x8x8x8xbf16, #tpu.memory_space<any>> -> memref<1x8x8x8xbf16, #tpu.memory_space<any>>
        %68 = tpu.memref_squeeze %67 : memref<1x8x8x8xbf16, #tpu.memory_space<any>> -> memref<8x8x8xbf16, #tpu.memory_space<any>>
        tpu.wait_dma2 semaphore(%64 : memref<!tpu.dma_semaphore, #tpu.memory_space<semaphore_mem>>) src(%68 : memref<8x8x8xbf16, #tpu.memory_space<any>>) dst(%arg7 : memref<8x8x8xbf16, #tpu.memory_space<vmem>>)
        tpu.yield
      }) : () -> ()
    } else {
    }
    %c0 = arith.constant 0 : index
    %c0_1 = arith.constant 0 : index
    %3 = vector.load %arg2[%c0, %c0_1] : memref<16x8xbf16, #tpu.memory_space<vmem>>, vector<16x8xbf16>
    %c0_2 = arith.constant 0 : index
    %c0_3 = arith.constant 0 : index
    %c0_4 = arith.constant 0 : index
    %4 = vector.load %arg7[%c0_2, %c0_3, %c0_4] : memref<8x8x8xbf16, #tpu.memory_space<vmem>>, vector<1x8x8xbf16>
    %5 = vector.shape_cast %4 : vector<1x8x8xbf16> to vector<8x8xbf16>
    %cst = arith.constant dense<0.000000e+00> : vector<16x8xf32>
    %6 = tpu.matmul %3, %5, %cst {dimension_numbers = #tpu.dot_dimension_numbers<[1], [0], [0], [1], [0, 0, 1, 1], [], []>} : vector<16x8xbf16>, vector<8x8xbf16>, vector<16x8xf32> -> vector<16x8xf32>
    %c1 = arith.constant 1 : index
    %c0_5 = arith.constant 0 : index
    %c0_6 = arith.constant 0 : index
    %7 = vector.load %arg7[%c1, %c0_5, %c0_6] : memref<8x8x8xbf16, #tpu.memory_space<vmem>>, vector<1x8x8xbf16>
    %8 = vector.shape_cast %7 : vector<1x8x8xbf16> to vector<8x8xbf16>
    %cst_7 = arith.constant dense<0.000000e+00> : vector<16x8xf32>
    %9 = tpu.matmul %3, %8, %cst_7 {dimension_numbers = #tpu.dot_dimension_numbers<[1], [0], [0], [1], [0, 0, 1, 1], [], []>} : vector<16x8xbf16>, vector<8x8xbf16>, vector<16x8xf32> -> vector<16x8xf32>
    %c2 = arith.constant 2 : index
    %c0_8 = arith.constant 0 : index
    %c0_9 = arith.constant 0 : index
    %10 = vector.load %arg7[%c2, %c0_8, %c0_9] : memref<8x8x8xbf16, #tpu.memory_space<vmem>>, vector<1x8x8xbf16>
    %11 = vector.shape_cast %10 : vector<1x8x8xbf16> to vector<8x8xbf16>
    %cst_10 = arith.constant dense<0.000000e+00> : vector<16x8xf32>
    %12 = tpu.matmul %3, %11, %cst_10 {dimension_numbers = #tpu.dot_dimension_numbers<[1], [0], [0], [1], [0, 0, 1, 1], [], []>} : vector<16x8xbf16>, vector<8x8xbf16>, vector<16x8xf32> -> vector<16x8xf32>
    %c3 = arith.constant 3 : index
    %c0_11 = arith.constant 0 : index
    %c0_12 = arith.constant 0 : index
    %13 = vector.load %arg7[%c3, %c0_11, %c0_12] : memref<8x8x8xbf16, #tpu.memory_space<vmem>>, vector<1x8x8xbf16>
    %14 = vector.shape_cast %13 : vector<1x8x8xbf16> to vector<8x8xbf16>
    %cst_13 = arith.constant dense<0.000000e+00> : vector<16x8xf32>
    %15 = tpu.matmul %3, %14, %cst_13 {dimension_numbers = #tpu.dot_dimension_numbers<[1], [0], [0], [1], [0, 0, 1, 1], [], []>} : vector<16x8xbf16>, vector<8x8xbf16>, vector<16x8xf32> -> vector<16x8xf32>
    %c4 = arith.constant 4 : index
    %c0_14 = arith.constant 0 : index
    %c0_15 = arith.constant 0 : index
    %16 = vector.load %arg7[%c4, %c0_14, %c0_15] : memref<8x8x8xbf16, #tpu.memory_space<vmem>>, vector<1x8x8xbf16>
    %17 = vector.shape_cast %16 : vector<1x8x8xbf16> to vector<8x8xbf16>
    %cst_16 = arith.constant dense<0.000000e+00> : vector<16x8xf32>
    %18 = tpu.matmul %3, %17, %cst_16 {dimension_numbers = #tpu.dot_dimension_numbers<[1], [0], [0], [1], [0, 0, 1, 1], [], []>} : vector<16x8xbf16>, vector<8x8xbf16>, vector<16x8xf32> -> vector<16x8xf32>
    %c5 = arith.constant 5 : index
    %c0_17 = arith.constant 0 : index
    %c0_18 = arith.constant 0 : index
    %19 = vector.load %arg7[%c5, %c0_17, %c0_18] : memref<8x8x8xbf16, #tpu.memory_space<vmem>>, vector<1x8x8xbf16>
    %20 = vector.shape_cast %19 : vector<1x8x8xbf16> to vector<8x8xbf16>
    %cst_19 = arith.constant dense<0.000000e+00> : vector<16x8xf32>
    %21 = tpu.matmul %3, %20, %cst_19 {dimension_numbers = #tpu.dot_dimension_numbers<[1], [0], [0], [1], [0, 0, 1, 1], [], []>} : vector<16x8xbf16>, vector<8x8xbf16>, vector<16x8xf32> -> vector<16x8xf32>
    %c6 = arith.constant 6 : index
    %c0_20 = arith.constant 0 : index
    %c0_21 = arith.constant 0 : index
    %22 = vector.load %arg7[%c6, %c0_20, %c0_21] : memref<8x8x8xbf16, #tpu.memory_space<vmem>>, vector<1x8x8xbf16>
    %23 = vector.shape_cast %22 : vector<1x8x8xbf16> to vector<8x8xbf16>
    %cst_22 = arith.constant dense<0.000000e+00> : vector<16x8xf32>
    %24 = tpu.matmul %3, %23, %cst_22 {dimension_numbers = #tpu.dot_dimension_numbers<[1], [0], [0], [1], [0, 0, 1, 1], [], []>} : vector<16x8xbf16>, vector<8x8xbf16>, vector<16x8xf32> -> vector<16x8xf32>
    %c7 = arith.constant 7 : index
    %c0_23 = arith.constant 0 : index
    %c0_24 = arith.constant 0 : index
    %25 = vector.load %arg7[%c7, %c0_23, %c0_24] : memref<8x8x8xbf16, #tpu.memory_space<vmem>>, vector<1x8x8xbf16>
    %26 = vector.shape_cast %25 : vector<1x8x8xbf16> to vector<8x8xbf16>
    %cst_25 = arith.constant dense<0.000000e+00> : vector<16x8xf32>
    %27 = tpu.matmul %3, %26, %cst_25 {dimension_numbers = #tpu.dot_dimension_numbers<[1], [0], [0], [1], [0, 0, 1, 1], [], []>} : vector<16x8xbf16>, vector<8x8xbf16>, vector<16x8xf32> -> vector<16x8xf32>
    %28 = tpu.concatenate %6, %9, %12, %15, %18, %21, %24, %27 in 0 : vector<16x8xf32>, vector<16x8xf32>, vector<16x8xf32>, vector<16x8xf32>, vector<16x8xf32>, vector<16x8xf32>, vector<16x8xf32>, vector<16x8xf32> -> vector<128x8xf32>
    %29 = arith.truncf %28 : vector<128x8xf32> to vector<128x8xbf16>
    %c0_26 = arith.constant 0 : index
    %c0_27 = arith.constant 0 : index
    %30 = vector.load %arg3[%c0_26, %c0_27] : memref<8x128xbf16, #tpu.memory_space<vmem>>, vector<8x128xbf16>
    %cst_28 = arith.constant dense<0.000000e+00> : vector<128x128xf32>
    %31 = tpu.matmul %29, %30, %cst_28 {dimension_numbers = #tpu.dot_dimension_numbers<[1], [0], [0], [1], [0, 0, 1, 1], [], []>} : vector<128x8xbf16>, vector<8x128xbf16>, vector<128x128xf32> -> vector<128x128xf32>
    %32 = vector.extract_strided_slice %31 {offsets = [0, 0], sizes = [16, 128], strides = [1, 1]} : vector<128x128xf32> to vector<16x128xf32>
    %c0_29 = arith.constant 0 : index
    %c0_30 = arith.constant 0 : index
    %c0_31 = arith.constant 0 : index
    %c0_32 = arith.constant 0 : index
    %33 = vector.load %arg5[%c0_29, %c0_30, %c0_31, %c0_32] : memref<1x4x16x128xf32, #tpu.memory_space<vmem>>, vector<1x1x16x128xf32>
    %34 = vector.shape_cast %33 : vector<1x1x16x128xf32> to vector<16x128xf32>
    %35 = vector.shape_cast %32 : vector<16x128xf32> to vector<1x1x16x128xf32>
    tpu.vector_store %arg5[%c0_29, %c0_30, %c0_31, %c0_32], %35 {strides = array<i32>} : memref<1x4x16x128xf32, #tpu.memory_space<vmem>>, vector<1x1x16x128xf32>,
    %36 = vector.extract_strided_slice %31 {offsets = [16, 0], sizes = [16, 128], strides = [1, 1]} : vector<128x128xf32> to vector<16x128xf32>
    %c0_33 = arith.constant 0 : index
    %c1_34 = arith.constant 1 : index
    %c0_35 = arith.constant 0 : index
    %c0_36 = arith.constant 0 : index
    %37 = vector.load %arg5[%c0_33, %c1_34, %c0_35, %c0_36] : memref<1x4x16x128xf32, #tpu.memory_space<vmem>>, vector<1x1x16x128xf32>
    %38 = vector.shape_cast %37 : vector<1x1x16x128xf32> to vector<16x128xf32>
    %39 = vector.shape_cast %36 : vector<16x128xf32> to vector<1x1x16x128xf32>
    tpu.vector_store %arg5[%c0_33, %c1_34, %c0_35, %c0_36], %39 {strides = array<i32>} : memref<1x4x16x128xf32, #tpu.memory_space<vmem>>, vector<1x1x16x128xf32>,
    %40 = vector.extract_strided_slice %31 {offsets = [32, 0], sizes = [16, 128], strides = [1, 1]} : vector<128x128xf32> to vector<16x128xf32>
    %c0_37 = arith.constant 0 : index
    %c2_38 = arith.constant 2 : index
    %c0_39 = arith.constant 0 : index
    %c0_40 = arith.constant 0 : index
    %41 = vector.load %arg5[%c0_37, %c2_38, %c0_39, %c0_40] : memref<1x4x16x128xf32, #tpu.memory_space<vmem>>, vector<1x1x16x128xf32>
    %42 = vector.shape_cast %41 : vector<1x1x16x128xf32> to vector<16x128xf32>
    %43 = vector.shape_cast %40 : vector<16x128xf32> to vector<1x1x16x128xf32>
    tpu.vector_store %arg5[%c0_37, %c2_38, %c0_39, %c0_40], %43 {strides = array<i32>} : memref<1x4x16x128xf32, #tpu.memory_space<vmem>>, vector<1x1x16x128xf32>,
    %44 = vector.extract_strided_slice %31 {offsets = [48, 0], sizes = [16, 128], strides = [1, 1]} : vector<128x128xf32> to vector<16x128xf32>
    %c0_41 = arith.constant 0 : index
    %c3_42 = arith.constant 3 : index
    %c0_43 = arith.constant 0 : index
    %c0_44 = arith.constant 0 : index
    %45 = vector.load %arg5[%c0_41, %c3_42, %c0_43, %c0_44] : memref<1x4x16x128xf32, #tpu.memory_space<vmem>>, vector<1x1x16x128xf32>
    %46 = vector.shape_cast %45 : vector<1x1x16x128xf32> to vector<16x128xf32>
    %47 = vector.shape_cast %44 : vector<16x128xf32> to vector<1x1x16x128xf32>
    tpu.vector_store %arg5[%c0_41, %c3_42, %c0_43, %c0_44], %47 {strides = array<i32>} : memref<1x4x16x128xf32, #tpu.memory_space<vmem>>, vector<1x1x16x128xf32>,
    %48 = vector.extract_strided_slice %31 {offsets = [64, 0], sizes = [16, 128], strides = [1, 1]} : vector<128x128xf32> to vector<16x128xf32>
    %c0_45 = arith.constant 0 : index
    %c0_46 = arith.constant 0 : index
    %c0_47 = arith.constant 0 : index
    %c0_48 = arith.constant 0 : index
    %49 = vector.load %arg6[%c0_45, %c0_46, %c0_47, %c0_48] : memref<1x4x16x128xf32, #tpu.memory_space<vmem>>, vector<1x1x16x128xf32>
    %50 = vector.shape_cast %49 : vector<1x1x16x128xf32> to vector<16x128xf32>
    %51 = vector.shape_cast %48 : vector<16x128xf32> to vector<1x1x16x128xf32>
    tpu.vector_store %arg6[%c0_45, %c0_46, %c0_47, %c0_48], %51 {strides = array<i32>} : memref<1x4x16x128xf32, #tpu.memory_space<vmem>>, vector<1x1x16x128xf32>,
    %52 = vector.extract_strided_slice %31 {offsets = [80, 0], sizes = [16, 128], strides = [1, 1]} : vector<128x128xf32> to vector<16x128xf32>
    %c0_49 = arith.constant 0 : index
    %c1_50 = arith.constant 1 : index
    %c0_51 = arith.constant 0 : index
    %c0_52 = arith.constant 0 : index
    %53 = vector.load %arg6[%c0_49, %c1_50, %c0_51, %c0_52] : memref<1x4x16x128xf32, #tpu.memory_space<vmem>>, vector<1x1x16x128xf32>
    %54 = vector.shape_cast %53 : vector<1x1x16x128xf32> to vector<16x128xf32>
    %55 = vector.shape_cast %52 : vector<16x128xf32> to vector<1x1x16x128xf32>
    tpu.vector_store %arg6[%c0_49, %c1_50, %c0_51, %c0_52], %55 {strides = array<i32>} : memref<1x4x16x128xf32, #tpu.memory_space<vmem>>, vector<1x1x16x128xf32>,
    %56 = vector.extract_strided_slice %31 {offsets = [96, 0], sizes = [16, 128], strides = [1, 1]} : vector<128x128xf32> to vector<16x128xf32>
    %c0_53 = arith.constant 0 : index
    %c2_54 = arith.constant 2 : index
    %c0_55 = arith.constant 0 : index
    %c0_56 = arith.constant 0 : index
    %57 = vector.load %arg6[%c0_53, %c2_54, %c0_55, %c0_56] : memref<1x4x16x128xf32, #tpu.memory_space<vmem>>, vector<1x1x16x128xf32>
    %58 = vector.shape_cast %57 : vector<1x1x16x128xf32> to vector<16x128xf32>
    %59 = vector.shape_cast %56 : vector<16x128xf32> to vector<1x1x16x128xf32>
    tpu.vector_store %arg6[%c0_53, %c2_54, %c0_55, %c0_56], %59 {strides = array<i32>} : memref<1x4x16x128xf32, #tpu.memory_space<vmem>>, vector<1x1x16x128xf32>,
    %60 = vector.extract_strided_slice %31 {offsets = [112, 0], sizes = [16, 128], strides = [1, 1]} : vector<128x128xf32> to vector<16x128xf32>
    %c0_57 = arith.constant 0 : index
    %c3_58 = arith.constant 3 : index
    %c0_59 = arith.constant 0 : index
    %c0_60 = arith.constant 0 : index
    %61 = vector.load %arg6[%c0_57, %c3_58, %c0_59, %c0_60] : memref<1x4x16x128xf32, #tpu.memory_space<vmem>>, vector<1x1x16x128xf32>
    %62 = vector.shape_cast %61 : vector<1x1x16x128xf32> to vector<16x128xf32>
    %63 = vector.shape_cast %60 : vector<16x128xf32> to vector<1x1x16x128xf32>
    tpu.vector_store %arg6[%c0_57, %c3_58, %c0_59, %c0_60], %63 {strides = array<i32>} : memref<1x4x16x128xf32, #tpu.memory_space<vmem>>, vector<1x1x16x128xf32>,
    return
  }
  func.func @transform_0(%arg0: i32, %arg1: i32) -> (i32, i32) {
    %c0_i32 = arith.constant 0 : i32
    %c0_i32_0 = arith.constant 0 : i32
    return %arg1, %c0_i32 : i32, i32
  }
  func.func @transform_1(%arg0: i32, %arg1: i32) -> (i32, i32) {
    %c0_i32 = arith.constant 0 : i32
    %c0_i32_0 = arith.constant 0 : i32
    %c0_i32_1 = arith.constant 0 : i32
    return %c0_i32, %c0_i32_0 : i32, i32
  }
  func.func @transform_3(%arg0: i32, %arg1: i32) -> (i32, i32, i32, i32) {
    %c0_i32 = arith.constant 0 : i32
    %c0_i32_0 = arith.constant 0 : i32
    %c0_i32_1 = arith.constant 0 : i32
    return %arg0, %c0_i32, %arg1, %c0_i32_0 : i32, i32, i32, i32
  }
  func.func @transform_4(%arg0: i32, %arg1: i32) -> (i32, i32, i32, i32) {
    %c0_i32 = arith.constant 0 : i32
    %c0_i32_0 = arith.constant 0 : i32
    %c0_i32_1 = arith.constant 0 : i32
    return %arg0, %c0_i32, %arg1, %c0_i32_0 : i32, i32, i32, i32
  }
}

</mosaic_0001>

<bundles_post_ra>
// kernel: segmentor_forward.2
= control target key start
LH: loop header
LB: loop body
LE: loop exit
PB: predicated region body
PF: predicated region fallthrough
CT: control target
= control target key end

     0   :  { %s829_s18 = smov 0   ;;  %s931_s0 = inlined_call_operand.vmem [shape: bf16[128,128], index: 0, kind: input, shape index: {}]   ;;  %s932_s1 = inlined_call_operand.vmem [shape: bf16[128,128], index: 1, kind: input, shape index: {}]   ;;  %s933_s2 = inlined_call_operand.vmem [shape: f32[1,128], index: 2, kind: input, shape index: {}]   ;;  %s934_s3 = inlined_call_operand.vmem [shape: bf16[128,8], index: 3, kind: input, shape index: {}]   ;;  %s935_s4 = inlined_call_operand.vmem [shape: f32[1,8], index: 4, kind: input, shape index: {}]   ;;  %s936_s5 = inlined_call_operand.vmem [shape: bf16[128,8], index: 5, kind: output, shape index: {}]  }
   0x1 LB: > { %s642_s19 = sadd.s32 4294967295, %s797_s18   ;;  %p646_p0 = scmp.ge.s32.totalorder %s797_s18, 1  ;;  %s797_s18 = sphi %s829_s18, %s15_s18  }
   0x2   : > { %p188_p1 = scmp.lt.s32.totalorder %s797_s18, 3 }
   0x4   : > { %p189_p2 = pnand %p646_p0, %p188_p1 }
   0x5   : > { %s647_s22 = sshll.u32 (!%p189_p2), %s642_s19, 3 }
   0x6   : > { %192 = sbr.rel (%p189_p2) target bundleno = 462 (0x1ce), region = 40  ;;  %p217_p3 = scmp.lt.s32.totalorder (!%p189_p2), %s647_s22, 15 }
   0xb   : > { %v771_v0 = vld [vmem:[%s932_s1 + $0x38] sm:$0xff]   ;;  %v772_v1 = vld [vmem:[%s932_s1 + $0x30] sm:$0xff]   ;;  %s938_s22 = smov (!%p217_p3, %s647_s22), 15  ;;  %v773_v2 = vld [vmem:[%s932_s1 + $0x28] sm:$0xff]   ;;  %vm577_vm0 = vcmask 60416  }
   0xc   : > { %715 = vmatprep.subr.bf16.mxu0 %v771_v0  ;;  %s648_s27 = sshll.u32 %s938_s22, 2  ;;  %v774_v3 = vld [vmem:[%s932_s1 + $0x20] sm:$0xff]   ;;  %v775_v5 = vld [vmem:[%s932_s1 + $0x18] sm:$0xff]   ;;  %v784_v7 = vld [vmem:[%s934_s3 + $0x30] sm:$0xff]  }
   0xd   : > { %716 = vmatpush3.bf16.msra.mxu0 %v771_v0  ;;  %s854_s30 = scalar_lea.vmem %s931_s0, %s648_s27  ;;  %v783_v6 = vld [vmem:[%s934_s3 + $0x38] sm:$0xff]   ;;  %v776_v8 = vld [vmem:[%s932_s1 + $0x10] sm:$0xff]   ;;  %v785_v9 = vld [vmem:[%s934_s3 + $0x28] sm:$0xff]   ;;  %s910_s16 = scalar_lea.vmem %s936_s5, %s648_s27 }
   0xe   : > { %717 = vmatprep.subr.bf16.mxu0 %v772_v1  ;;  %v779_v4 = vld [vmem:[%s854_s30] sm:$0xff]   ;;  %739 = vmatprep.subr.bf16.mxu1 %v783_v6  ;;  %v777_v10 = vld [vmem:[%s932_s1 + $0x8] sm:$0xff]   ;;  %v787_v13 = vld [vmem:[%s934_s3 + $0x18] sm:$0xff]  }
   0xf   : > { %731 = vmatprep.mubr.bf16.mxu0 %v779_v4  ;;  %740 = vmatpush3.bf16.msra.mxu1 %v783_v6  ;;  %v786_v11 = vld [vmem:[%s934_s3 + $0x20] sm:$0xff]   ;;  %v780_v14 = vld [vmem:[%s854_s30 + $0x8] sm:$0xff]   ;;  %v781_v15 = vld [vmem:[%s854_s30 + $0x10] sm:$0xff]  }
  0x10   : > { %741 = vmatprep.subr.bf16.mxu1 %v784_v7  ;;  %v778_v12 = vld [vmem:[%s932_s1] sm:$0xff]   ;;  %v782_v16 = vld [vmem:[%s854_s30 + $0x18] sm:$0xff]   ;;  %v788_v17 = vld [vmem:[%s934_s3 + $0x10] sm:$0xff]  }
  0x11   : > { %718 = vmatpush3.bf16.msra.mxu0 %v772_v1  ;;  %v789_v18 = vld [vmem:[%s934_s3 + $0x8] sm:$0xff]   ;;  %v790_v19 = vld [vmem:[%s934_s3] sm:$0xff]  }
  0x12   : > { %719 = vmatprep.subr.bf16.mxu0 %v773_v2  ;;  %v651_v22 = vld [vmem:[%s933_s2] ss:$0 sm:$0xff] }
  0x13   : > { %742 = vmatpush3.bf16.msra.mxu1 %v784_v7  ;;  %v664_v49 = vld [vmem:[%s935_s4] ss:$0 sm:$0xff] }
  0x14   : > { %743 = vmatprep.subr.bf16.mxu1 %v785_v9 }
  0x15   : > { %720 = vmatpush3.bf16.msra.mxu0 %v773_v2 }
  0x16   : > { %721 = vmatprep.subr.bf16.mxu0 %v774_v3 }
  0x17   : > { %744 = vmatpush3.bf16.msra.mxu1 %v785_v9 }
  0x18   : > { %745 = vmatprep.subr.bf16.mxu1 %v786_v11 }
  0x19   : > { %722 = vmatpush3.bf16.msra.mxu0 %v774_v3 }
  0x1a   : > { %723 = vmatprep.subr.bf16.mxu0 %v775_v5 }
  0x1b   : > { %746 = vmatpush3.bf16.msra.mxu1 %v786_v11 }
  0x1c   : > { %747 = vmatprep.subr.bf16.mxu1 %v787_v13 }
  0x1d   : > { %724 = vmatpush3.bf16.msra.mxu0 %v775_v5 }
  0x1e   : > { %725 = vmatprep.subr.bf16.mxu0 %v776_v8 }
  0x1f   : > { %748 = vmatpush3.bf16.msra.mxu1 %v787_v13 }
  0x20   : > { %749 = vmatprep.subr.bf16.mxu1 %v788_v17 }
  0x21   : > { %726 = vmatpush3.bf16.msra.mxu0 %v776_v8 }
  0x22   : > { %727 = vmatprep.subr.bf16.mxu0 %v777_v10 }
  0x23   : > { %750 = vmatpush3.bf16.msra.mxu1 %v788_v17 }
  0x24   : > { %751 = vmatprep.subr.bf16.mxu1 %v789_v18 }
  0x25   : > { %728 = vmatpush3.bf16.msra.mxu0 %v777_v10 }
  0x26   : > { %729 = vmatprep.subr.bf16.mxu0 %v778_v12 }
  0x27   : > { %752 = vmatpush3.bf16.msra.mxu1 %v789_v18 }
  0x28   : > { %753 = vmatprep.subr.bf16.mxu1 %v790_v19 }
  0x29   : > { %730 = vmatpush3.bf16.msra.mxu0 %v778_v12 }
  0x2b   : > { %754 = vmatpush3.bf16.msra.mxu1 %v790_v19 }
  0x2c   : > { %732 = vmatmul.mubr.bf16.vlgmr.msra.gmra.mxu0 %v780_v14 }
  0x2d   : > { %735 = vmatprep.mubr.bf16.mxu0 %v781_v15 }
  0x34   : > { %736 = vmatmul.mubr.bf16.gmra.mxu0 %v782_v16 }
  0xec   : > { %v733_v20 = vpop.f32.mrf.mxu0 }
  0xed   : > { %v375_v26 = vadd.f32 %v733_v20, %v651_v22 }
  0xee   : > { %v366_v21 = vpop.f32.mrf.mxu0 }
  0xef   : > { %v367_v24 = vadd.f32 %v651_v22, %v366_v21  ;;  %v399_v33 = vmax.f32 %v375_v26, 0.0 }
  0xf0   : > { %v734_v23 = vpop.f32.mrf.mxu0 }
  0xf1   : > { %v378_v25 = vadd.f32 %v734_v23, %v651_v22  ;;  %v397_v31 = vmax.f32 %v367_v24, 0.0 }
  0xf2   : > { %v369_v27 = vpop.f32.mrf.mxu0 }
  0xf3   : > { %v370_v28 = vadd.f32 %v651_v22, %v369_v27  ;;  %v400_v29 = vmax.f32 %v378_v25, 0.0 }
  0xf4   : > { %v737_v30 = vpop.f32.mrf.mxu0 }
  0xf5   : > { %v398_v32 = vmax.f32 %v370_v28, 0.0  ;;  %v406_v36 = vpack.c.bf16 %v400_v29, %v399_v33  ;;  %v391_v40 = vadd.f32 %v737_v30, %v651_v22 }
  0xf6   : > { %v382_v34 = vpop.f32.mrf.mxu0 }
  0xf7   : > { %v405_v35 = vpack.c.bf16 %v398_v32, %v397_v31  ;;  %v383_v38 = vadd.f32 %v651_v22, %v382_v34  ;;  %v403_v46 = vmax.f32 %v391_v40, 0.0 }
  0xf8   : > { %v738_v37 = vpop.f32.mrf.mxu0 }
  0xf9   : > { %v394_v39 = vadd.f32 %v738_v37, %v651_v22  ;;  %755 = vmatprep.mubr.bf16.mxu1 %v405_v35  ;;  %v401_v44 = vmax.f32 %v383_v38, 0.0 }
  0xfa   : > { %v385_v41 = vpop.f32.mrf.mxu0  ;;  %756 = vmatmul.mubr.bf16.vlgmr.msra.gmra.mxu1 %v406_v36 }
  0xfb   : > { %v386_v42 = vadd.f32 %v651_v22, %v385_v41  ;;  %v404_v43 = vmax.f32 %v394_v39, 0.0 }
  0xfd   : > { %v402_v45 = vmax.f32 %v386_v42, 0.0  ;;  %v408_v48 = vpack.c.bf16 %v404_v43, %v403_v46 }
  0xff   : > { %v407_v47 = vpack.c.bf16 %v402_v45, %v401_v44 }
 0x101   : > { %759 = vmatprep.mubr.bf16.mxu1 %v407_v47 }
 0x102   : > { %760 = vmatmul.mubr.bf16.gmra.mxu1 %v408_v48 }
 0x1ba   : > { %v757_v50 = vpop.f32.mrf.mxu1 }
 0x1bb   : > { %v523_v51 = vadd.f32 %v757_v50, %v664_v49 }
 0x1bc   : > { %v514_v52 = vpop.f32.mrf.mxu1 }
 0x1bd   : > { %v685_v53 = vpack.c.bf16 %v523_v51, %v523_v51  ;;  %v515_v54 = vadd.f32 %v664_v49, %v514_v52 }
 0x1be   : > { %v758_v55 = vpop.f32.mrf.mxu1 }
 0x1bf   : > { %580 = vst.msk [vmem:[%s910_s16 + $0x8] sm:$0xf] %vm577_vm0, %v685_v53  ;;  %v683_v56 = vpack.c.bf16 %v515_v54, %v515_v54  ;;  %v526_v57 = vadd.f32 %v758_v55, %v664_v49 }
 0x1c0   : > { %v517_v58 = vpop.f32.mrf.mxu1 }
 0x1c1   : > { %578 = vst.msk [vmem:[%s910_s16] sm:$0xf] %vm577_vm0, %v683_v56  ;;  %v686_v59 = vpack.c.bf16 %v526_v57, %v526_v57  ;;  %v518_v60 = vadd.f32 %v664_v49, %v517_v58 }
 0x1c2   : > { %v761_v61 = vpop.f32.mrf.mxu1 }
 0x1c3   : > { %581 = vst.msk [vmem:[%s910_s16 + $0xc] sm:$0xf] %vm577_vm0, %v686_v59  ;;  %v684_v62 = vpack.c.bf16 %v518_v60, %v518_v60  ;;  %v539_v63 = vadd.f32 %v761_v61, %v664_v49 }
 0x1c4   : > { %v530_v0 = vpop.f32.mrf.mxu1 }
 0x1c5   : > { %579 = vst.msk [vmem:[%s910_s16 + $0x4] sm:$0xf] %vm577_vm0, %v684_v62  ;;  %v689_v1 = vpack.c.bf16 %v539_v63, %v539_v63  ;;  %v531_v2 = vadd.f32 %v664_v49, %v530_v0 }
 0x1c6   : > { %v762_v3 = vpop.f32.mrf.mxu1 }
 0x1c7   : > { %584 = vst.msk [vmem:[%s910_s16 + $0x18] sm:$0xf] %vm577_vm0, %v689_v1  ;;  %v687_v4 = vpack.c.bf16 %v531_v2, %v531_v2  ;;  %v542_v5 = vadd.f32 %v762_v3, %v664_v49 }
 0x1c8   : > { %v533_v6 = vpop.f32.mrf.mxu1 }
 0x1c9   : > { %582 = vst.msk [vmem:[%s910_s16 + $0x10] sm:$0xf] %vm577_vm0, %v687_v4  ;;  %v690_v7 = vpack.c.bf16 %v542_v5, %v542_v5  ;;  %v534_v8 = vadd.f32 %v664_v49, %v533_v6 }
 0x1cb   : > { %585 = vst.msk [vmem:[%s910_s16 + $0x1c] sm:$0xf] %vm577_vm0, %v690_v7  ;;  %v688_v9 = vpack.c.bf16 %v534_v8, %v534_v8 }
 0x1cd   : > { %583 = vst.msk [vmem:[%s910_s16 + $0x14] sm:$0xf] %vm577_vm0, %v688_v9 }
 0x1ce PF: > { %s15_s18 = sadd.s32 1, %s797_s18  }
 0x1cf   : > { %p12_p4 = scmp.ge.s32.totalorder %s15_s18, 4  }
 0x1d1   :  { %14 = sbr.rel (!%p12_p4) target bundleno = 1 (0x1), region = 70 }

// kernel: segmentor_forward.3
= control target key start
LH: loop header
LB: loop body
LE: loop exit
PB: predicated region body
PF: predicated region fallthrough
CT: control target
= control target key end

     0   :  { %10 = vsyncpa [#allocation4], 0  ;;  %s1524_s0 = inlined_call_operand.vmem [shape: bf16[16,8], index: 0, kind: input, shape index: {}]   ;;  %s1525_s1 = inlined_call_operand.vmem [shape: bf16[8,128], index: 1, kind: input, shape index: {}]   ;;  %s1526_s2 = inlined_call_operand.vmem [shape: bf16[2,8,8,8], index: 2, kind: input, shape index: {}]   ;;  %s1527_s3 = inlined_call_operand.hbm [shape: f32[2,4,16,128], index: 3, kind: output, shape index: {0}]   ;;  %s1528_s4 = inlined_call_operand.hbm [shape: f32[2,4,16,128], index: 4, kind: output, shape index: {1}]  }
   0x1   :  { %12 = vsyncpa [#allocation4 + $0x1], 0 }
   0x2   :  { %13 = vsyncpa [#allocation6], 0 }
   0x3   :  { %15 = vsyncpa [#allocation6 + $0x1], 0  ;;  %s1307_s15 = smov 0   ;;  %s1309_s16 = smov 0  }
   0x4   :  { %s1311_s17 = smov 0   ;;  %s1313_s18 = smov 0  }
   0x5   :  { %s1315_s19 = smov 0   ;;  %s1317_s20 = smov 0  }
   0x6 LB: > { %s957_s21 = sadd.s32 4294967295, %s1274_s20   ;;  %s958_s22 = sadd.s32 4294967294, %s1274_s20   ;;  %s1274_s20 = sphi %s1317_s20, %s21_s20   ;;  %s1270_s19 = sphi %s1315_s19, %s1535_s19   ;;  %s1266_s18 = sphi %s1313_s18, %s1534_s18   ;;  %s1262_s17 = sphi %s1311_s17, %s1533_s17   ;;  %s1258_s16 = sphi %s1309_s16, %s1532_s16   ;;  %s1254_s15 = sphi %s1307_s15, %s1531_s15  }
   0x7   : > { %s33_s23 = sadd.s32 1, %s1270_s19  ;;  %s89_s24 = sadd.s32 1, %s1262_s17 }
   0x8   : > { %p35_p0 = scmp.ge.s32.totalorder %s33_s23, 2  ;;  %p99_p1 = scmp.ne.s32.totalorder %s1262_s17, %s1258_s16 }
   0x9   : > { %p100_p2 = scmp.eq.s32.totalorder %s957_s21, 1  ;;  %p105_p3 = scmp.ne.s32.totalorder %s1258_s16, %s1254_s15 }
   0xa   : > { %s1537_s23 = smov (%p35_p0, %s33_s23), 0  ;;  %p106_p5 = scmp.eq.s32.totalorder %s958_s22, 1 }
   0xb   : > { %p1347_p4 = por %p100_p2, %p99_p1  ;;  %s84_s26 = ssub.s32 %s1270_s19, %s1537_s23 }
   0xc   : > { %p961_p6 = scmp.ge.s32.totalorder %s1274_s20, 1  ;;  %p87_p7 = scmp.eq.s32.totalorder %s84_s26, 0 }
   0xd   : > { %p1354_p8 = por %p106_p5, %p105_p3  ;;  %p164_p9 = scmp.lt.s32.totalorder %s1274_s20, 3 }
   0xe   : > { %s1360_s28 = scalar_select %p87_p7, %s1262_s17, %s89_s24  }
   0xf   : > { %p165_p10 = pnand %p961_p6, %p164_p9 }
  0x10   : > { %s1363_s29 = sand.u32 (!%p165_p10), 1, %s1258_s16  }
  0x11   : > { %168 = sbr.rel (%p165_p10) target bundleno = 483 (0x1e3), region = 28  ;;  %s962_s30 = sshll.u32 (!%p165_p10), %s1363_s29, 6 }
  0x12   : > { %s1366_s5 = scalar_lea.vmem (!%p165_p10), [#allocation3], %s962_s30  ;;  %s1368_s6 = scalar_lea.vmem (!%p165_p10), [#allocation5], %s962_s30 }
  0x16   : > { %s1003_s7 = sshll.u32 %s1266_s18, 5 }
  0x17   : > { %s208_s10 = scalar_lea.vmem %s1526_s2, %s1003_s7 }
  0x18   : > { %v242_v0 = vld [vmem:[%s208_s10] sm:$0xff]  ;;  %v244_v1 = vld [vmem:[%s208_s10 + $0x8] sm:$0xff]  ;;  %v246_v2 = vld [vmem:[%s208_s10 + $0x10] sm:$0xff] }
  0x19   : > { %243 = vst [vmem:[#allocation2] sm:$0xff] %v242_v0  ;;  %245 = vst [vmem:[#allocation2 + $0x8] sm:$0xff] %v244_v1  ;;  %v248_v3 = vld [vmem:[%s208_s10 + $0x18] sm:$0xff] }
  0x1a   : > { %247 = vst [vmem:[#allocation2 + $0x10] sm:$0xff] %v246_v2  ;;  %249 = vst [vmem:[#allocation2 + $0x18] sm:$0xff] %v248_v3 }
  0x1b   : > { %257 = vsyncadd [#allocation7], 512 }
  0x1c   : > { %1242 = dma.done.wait [#allocation7], 512 }
  0x1d   : > { %1243 = vsyncadd [#allocation7], 4294966784  ;;  %vm275_vm0 = vcmask 1043456   ;;  %v1276_v6 = vmov 0.0   ;;  %v1165_v9 = vld [vmem:[%s1524_s0] sm:$0xff]   ;;  %vm271_vm1 = vcmask 64512  }
  0x1e   : > { %1031 = vmatprep.subr.bf16.mxu0 %v1276_v6  ;;  %1037 = vmatprep.subr.bf16.mxu1 %v1276_v6  ;;  %vm1277_vm2 = vmmov 0   ;;  %v650_v22 = vld [vmem:[%s1525_s1] sm:$0xf]  ;;  %s1004_s21 = sshll.u32 %s1266_s18, 10  ;;  %s818_s22 = sshll.u32 %s1366_s5, 4  ;;  %s1430_s22 = int_to_ptr.vmem [resolvable:$true] %s818_s22 }
  0x1f   : > { %1033 = vmatprep.mubr.msk.bf16.mxu0 %vm1277_vm2, %v1276_v6  ;;  %1039 = vmatprep.mubr.msk.bf16.mxu1 %vm1277_vm2, %v1276_v6  ;;  %v676_v23 = vsel %vm275_vm0, %v650_v22, 0  ;;  %s1428_s30 = scalar_lea.hbm %s1527_s3, %s1004_s21  ;;  %s798_s7 = scalar_lea.sflag [#allocation4], %s1363_s29 }
  0x20   : > { %v265_v4 = vld [vmem:[#allocation2] sm:$0xf]  ;;  %v321_v5 = vld [vmem:[#allocation2 + $0x4] sm:$0xf]  ;;  %v367_v10 = vld [vmem:[#allocation2 + $0x8] sm:$0xf] }
  0x21   : > { %v277_v7 = vsel %vm275_vm0, %v265_v4, 0  ;;  %v323_v8 = vsel %vm275_vm0, %v321_v5, 0  ;;  %v369_v11 = vsel %vm275_vm0, %v367_v10, 0  ;;  %v413_v12 = vld [vmem:[#allocation2 + $0xc] sm:$0xf]  ;;  %s1166_s8 = scalar_lea.vmem %s1430_s22, 1024 }
  0x22   : > { %1032 = vmatpush3.bf16.msra.mxu0 %v277_v7  ;;  %1038 = vmatpush3.bf16.msra.mxu1 %v323_v8  ;;  %v415_v13 = vsel %vm275_vm0, %v413_v12, 0  ;;  %v459_v14 = vld [vmem:[#allocation2 + $0x10] sm:$0xf]  ;;  %v505_v15 = vld [vmem:[#allocation2 + $0x14] sm:$0xf]  ;;  %p1167_p11 = scmp.ne.s32.totalorder %s1430_s22, %s1166_s8  ;;  %s1278_s9 = smov [#allocation3]  }
  0x23   : > { %1043 = vmatprep.subr.bf16.mxu0 %v1276_v6  ;;  %1049 = vmatprep.subr.bf16.mxu1 %v1276_v6  ;;  %v461_v16 = vsel %vm275_vm0, %v459_v14, 0  ;;  %v507_v17 = vsel %vm275_vm0, %v505_v15, 0  ;;  %v551_v18 = vld [vmem:[#allocation2 + $0x18] sm:$0xf]  ;;  %v597_v19 = vld [vmem:[#allocation2 + $0x1c] sm:$0xf] }
  0x24   : > { %v553_v20 = vsel %vm275_vm0, %v551_v18, 0  ;;  %v599_v21 = vsel %vm275_vm0, %v597_v19, 0  ;;  %p1168_p12 = pnand %p1167_p11, %p1347_p4  ;;  %s1170_s10 = sshll.u32 %s1278_s9, 4  ;;  %s1171_s10 = int_to_ptr.vmem [resolvable:$false] %s1170_s10 }
  0x25   : > { %1034 = vmatmul.mubr.msk.bf16.vlgmr.msra.gmra.mxu0 %vm271_vm1, %v1165_v9  ;;  %1040 = vmatmul.mubr.msk.bf16.vlgmr.msra.gmra.mxu1 %vm271_vm1, %v1165_v9  ;;  %s1172_s11 = scalar_lea.vmem %s1171_s10, 2048  ;;  %p1173_p0 = scmp.lt.s32.totalorder %s1430_s22, %s1171_s10 }
  0x26   : > { %1044 = vmatpush3.bf16.msra.mxu0 %v369_v11  ;;  %1050 = vmatpush3.bf16.msra.mxu1 %v415_v13  ;;  %p1169_p13 = pneg %p1168_p12  ;;  %p1174_p1 = scmp.lt.s32.totalorder %s1172_s11, %s1166_s8 }
  0x27   : > { %1045 = vmatprep.mubr.msk.bf16.mxu0 %vm1277_vm2, %v1276_v6  ;;  %1051 = vmatprep.mubr.msk.bf16.mxu1 %vm1277_vm2, %v1276_v6 }
  0x28   : > { %1055 = vmatprep.subr.bf16.mxu0 %v1276_v6  ;;  %1061 = vmatprep.subr.bf16.mxu1 %v1276_v6  ;;  %p1175_p2 = por %p1174_p1, %p1173_p0 }
  0x2a   : > { %p1176_p3 = pnand %p1175_p2, %p1169_p13 }
  0x2d   : > { %1046 = vmatmul.mubr.msk.bf16.vlgmr.msra.gmra.mxu0 %vm271_vm1, %v1165_v9  ;;  %1052 = vmatmul.mubr.msk.bf16.vlgmr.msra.gmra.mxu1 %vm271_vm1, %v1165_v9 }
  0x2e   : > { %1056 = vmatpush3.bf16.msra.mxu0 %v461_v16  ;;  %1062 = vmatpush3.bf16.msra.mxu1 %v507_v17 }
  0x2f   : > { %1057 = vmatprep.mubr.msk.bf16.mxu0 %vm1277_vm2, %v1276_v6  ;;  %1063 = vmatprep.mubr.msk.bf16.mxu1 %vm1277_vm2, %v1276_v6 }
  0x30   : > { %1067 = vmatprep.subr.bf16.mxu0 %v1276_v6  ;;  %1073 = vmatprep.subr.bf16.mxu1 %v1276_v6 }
  0x35   : > { %1058 = vmatmul.mubr.msk.bf16.vlgmr.msra.gmra.mxu0 %vm271_vm1, %v1165_v9  ;;  %1064 = vmatmul.mubr.msk.bf16.vlgmr.msra.gmra.mxu1 %vm271_vm1, %v1165_v9 }
  0x36   : > { %1068 = vmatpush3.bf16.msra.mxu0 %v553_v20  ;;  %1074 = vmatpush3.bf16.msra.mxu1 %v599_v21 }
  0x37   : > { %1069 = vmatprep.mubr.msk.bf16.mxu0 %vm1277_vm2, %v1276_v6  ;;  %1075 = vmatprep.mubr.msk.bf16.mxu1 %vm1277_vm2, %v1276_v6 }
  0x38   : > { %1099 = vmatprep.subr.msk.bf16.mxu0 %vm275_vm0, %v650_v22  ;;  %1100 = vmatprep.subr.msk.bf16.mxu1 %vm275_vm0, %v650_v22 }
  0x3d   : > { %1070 = vmatmul.mubr.msk.bf16.vlgmr.msra.gmra.mxu0 %vm271_vm1, %v1165_v9  ;;  %1076 = vmatmul.mubr.msk.bf16.vlgmr.msra.gmra.mxu1 %vm271_vm1, %v1165_v9 }
  0x3e   : > { %1080 = vmatpush3.bf16.msra.mxu0 %v676_v23  ;;  %1098 = vmatpush3.bf16.msra.mxu1 %v676_v23 }
  0xe5   : > { %v313_v24 = vpop.f32.mrf.mxu0  ;;  %v359_v25 = vpop.f32.mrf.mxu1 }
  0xe7   : > { %v1035_v26 = vpop.f32.mrf.mxu0  ;;  %v1041_v27 = vpop.f32.mrf.mxu1 }
  0xe9   : > { %v316_v28 = vpop.f32.mrf.mxu0  ;;  %v362_v29 = vpop.f32.mrf.mxu1 }
  0xea   : > { %v642_v30 = vpack.c.bf16 %v316_v28, %v313_v24  ;;  %v643_v31 = vpack.c.bf16 %v362_v29, %v359_v25 }
  0xeb   : > { %v1036_v32 = vpop.f32.mrf.mxu0  ;;  %v1042_v33 = vpop.f32.mrf.mxu1 }
  0xec   : > { %1081 = vmatprep.mubr.msk.bf16.mxu0 %vm271_vm1, %v642_v30 }
  0xed   : > { %v405_v34 = vpop.f32.mrf.mxu0  ;;  %v451_v35 = vpop.f32.mrf.mxu1  ;;  %1082 = vmatmul.mubr.msk.bf16.vlgmr.msra.gmra.mxu0 %vm271_vm1, %v643_v31 }
  0xef   : > { %v1047_v36 = vpop.f32.mrf.mxu0  ;;  %v1053_v37 = vpop.f32.mrf.mxu1 }
  0xf1   : > { %v408_v38 = vpop.f32.mrf.mxu0  ;;  %v454_v39 = vpop.f32.mrf.mxu1 }
  0xf2   : > { %v644_v40 = vpack.c.bf16 %v408_v38, %v405_v34  ;;  %v645_v41 = vpack.c.bf16 %v454_v39, %v451_v35 }
  0xf3   : > { %v1048_v42 = vpop.f32.mrf.mxu0  ;;  %v1054_v43 = vpop.f32.mrf.mxu1 }
  0xf4   : > { %1085 = vmatprep.mubr.msk.bf16.mxu0 %vm271_vm1, %v644_v40 }
  0xf5   : > { %v497_v44 = vpop.f32.mrf.mxu0  ;;  %v543_v45 = vpop.f32.mrf.mxu1  ;;  %1086 = vmatmul.mubr.msk.bf16.gmra.mxu0 %vm271_vm1, %v645_v41 }
  0xf7   : > { %v1059_v46 = vpop.f32.mrf.mxu0  ;;  %v1065_v47 = vpop.f32.mrf.mxu1 }
  0xf9   : > { %v500_v48 = vpop.f32.mrf.mxu0  ;;  %v546_v49 = vpop.f32.mrf.mxu1 }
  0xfa   : > { %v646_v50 = vpack.c.bf16 %v500_v48, %v497_v44  ;;  %v647_v51 = vpack.c.bf16 %v546_v49, %v543_v45 }
  0xfb   : > { %v1060_v52 = vpop.f32.mrf.mxu0  ;;  %v1066_v53 = vpop.f32.mrf.mxu1 }
  0xfc   : > { %1089 = vmatprep.mubr.msk.bf16.mxu1 %vm271_vm1, %v646_v50 }
  0xfd   : > { %v589_v54 = vpop.f32.mrf.mxu0  ;;  %v635_v55 = vpop.f32.mrf.mxu1  ;;  %1090 = vmatmul.mubr.msk.bf16.vlgmr.msra.gmra.mxu1 %vm271_vm1, %v647_v51 }
  0xff   : > { %v1071_v56 = vpop.f32.mrf.mxu0  ;;  %v1077_v57 = vpop.f32.mrf.mxu1 }
 0x101   : > { %v592_v58 = vpop.f32.mrf.mxu0  ;;  %v638_v59 = vpop.f32.mrf.mxu1 }
 0x102   : > { %v648_v60 = vpack.c.bf16 %v592_v58, %v589_v54  ;;  %v649_v61 = vpack.c.bf16 %v638_v59, %v635_v55 }
 0x103   : > { %v1072_v62 = vpop.f32.mrf.mxu0  ;;  %v1078_v63 = vpop.f32.mrf.mxu1 }
 0x104   : > { %1093 = vmatprep.mubr.msk.bf16.mxu1 %vm271_vm1, %v648_v60 }
 0x105   : > { %1094 = vmatmul.mubr.msk.bf16.gmra.mxu1 %vm271_vm1, %v649_v61 }
 0x1ad   : > { %v1083_v0 = vpop.f32.mrf.mxu0 }
 0x1ae   : > { %983 = vst [vmem:[%s1366_s5 + $0x10] sm:$0xff] %v1083_v0 }
 0x1af   : > { %v712_v1 = vpop.f32.mrf.mxu0 }
 0x1b0   : > { %775 = vst [vmem:[%s1366_s5] sm:$0xff] %v712_v1 }
 0x1b1   : > { %v1084_v2 = vpop.f32.mrf.mxu0 }
 0x1b2   : > { %984 = vst [vmem:[%s1366_s5 + $0x18] sm:$0xff] %v1084_v2 }
 0x1b3   : > { %v715_v3 = vpop.f32.mrf.mxu0 }
 0x1b4   : > { %776 = vst [vmem:[%s1366_s5 + $0x8] sm:$0xff] %v715_v3 }
 0x1b5   : > { %v1087_v4 = vpop.f32.mrf.mxu0 }
 0x1b6   : > { %987 = vst [vmem:[%s1366_s5 + $0x30] sm:$0xff] %v1087_v4 }
 0x1b7   : > { %v728_v5 = vpop.f32.mrf.mxu0 }
 0x1b8   : > { %985 = vst [vmem:[%s1366_s5 + $0x20] sm:$0xff] %v728_v5 }
 0x1b9   : > { %v1088_v6 = vpop.f32.mrf.mxu0 }
 0x1ba   : > { %988 = vst [vmem:[%s1366_s5 + $0x38] sm:$0xff] %v1088_v6 }
 0x1bb   : > { %v731_v7 = vpop.f32.mrf.mxu0 }
 0x1bc   : > { %986 = vst [vmem:[%s1366_s5 + $0x28] sm:$0xff] %v731_v7 }
 0x1bd   : > { %v1091_v8 = vpop.f32.mrf.mxu1 }
 0x1be   : > { %1179 = shalt.err (!%p1176_p3)
}
 0x1bf   : > { %s1180_s5 = scalar_lea.hbm %s1428_s30, 1024  ;;  %s1184_s14 = scalar_lea.hbm %s1527_s3, 2048 }
 0x1c0   : > { %p1181_p5 = scmp.ne.s32.totalorder %s1428_s30, %s1180_s5  ;;  %p1185_p9 = scmp.lt.s32.totalorder %s1428_s30, %s1527_s3 }
 0x1c1   : > { %p1186_p10 = scmp.lt.s32.totalorder %s1184_s14, %s1180_s5 }
 0x1c2   : > { %p1182_p6 = pnand %p1181_p5, %p1347_p4 }
 0x1c3   : > { %p1187_p11 = por %p1186_p10, %p1185_p9 }
 0x1c4   : > { %p1183_p7 = pneg %p1182_p6 }
 0x1c6   : > { %p1188_p12 = pnand %p1187_p11, %p1183_p7 }
 0x1c8   : > { %1191 = shalt.err (!%p1188_p12)
}
 0x1c9   : > { %s1279_s8 = smov 128   ;;  %s1280_s9 = smov 8   ;;  %989 = vst [vmem:[%s1368_s6 + $0x10] sm:$0xff] %v1091_v8  ;;  %v744_v9 = vpop.f32.mrf.mxu1 }
 0x1ca   : > { %1101 = dma.vmem_to_hbm [thread:$0]  (%p1347_p4), %s1430_s22, 1024, %s1428_s30, %s798_s7, %s1279_s8, %s1279_s8, %s1280_s9  }
 0x1cb   : > { %786 = vst [vmem:[%s1368_s6] sm:$0xff] %v744_v9  ;;  %v1092_v10 = vpop.f32.mrf.mxu1  ;;  %s836_s10 = sshll.u32 %s1368_s6, 4  ;;  %s1473_s30 = scalar_lea.hbm %s1528_s4, %s1004_s21  ;;  %s1475_s10 = int_to_ptr.vmem [resolvable:$true] %s836_s10 }
 0x1cc   : > { %990 = vst [vmem:[%s1368_s6 + $0x18] sm:$0xff] %v1092_v10  ;;  %s803_s7 = scalar_lea.sflag [#allocation6], %s1363_s29  ;;  %s1192_s5 = scalar_lea.vmem %s1475_s10, 1024 }
 0x1cd   : > { %v747_v11 = vpop.f32.mrf.mxu1  ;;  %p1193_p13 = scmp.ne.s32.totalorder %s1475_s10, %s1192_s5  ;;  %s1281_s12 = smov [#allocation5]  }
 0x1ce   : > { %787 = vst [vmem:[%s1368_s6 + $0x8] sm:$0xff] %v747_v11  ;;  %s1196_s18 = sshll.u32 %s1281_s12, 4  ;;  %s1197_s18 = int_to_ptr.vmem [resolvable:$false] %s1196_s18 }
 0x1cf   : > { %v1095_v12 = vpop.f32.mrf.mxu1  ;;  %p1194_p0 = pnand %p1193_p13, %p1347_p4  ;;  %s1198_s13 = scalar_lea.vmem %s1197_s18, 2048 }
 0x1d0   : > { %993 = vst [vmem:[%s1368_s6 + $0x30] sm:$0xff] %v1095_v12  ;;  %p1199_p2 = scmp.lt.s32.totalorder %s1475_s10, %s1197_s18  ;;  %p1200_p3 = scmp.lt.s32.totalorder %s1198_s13, %s1192_s5 }
 0x1d1   : > { %v760_v13 = vpop.f32.mrf.mxu1  ;;  %p1195_p1 = pneg %p1194_p0 }
 0x1d2   : > { %991 = vst [vmem:[%s1368_s6 + $0x20] sm:$0xff] %v760_v13  ;;  %p1201_p5 = por %p1200_p3, %p1199_p2 }
 0x1d3   : > { %v1096_v14 = vpop.f32.mrf.mxu1 }
 0x1d4   : > { %994 = vst [vmem:[%s1368_s6 + $0x38] sm:$0xff] %v1096_v14  ;;  %p1202_p6 = pnand %p1201_p5, %p1195_p1 }
 0x1d5   : > { %v763_v15 = vpop.f32.mrf.mxu1 }
 0x1d6   : > { %992 = vst [vmem:[%s1368_s6 + $0x28] sm:$0xff] %v763_v15 }
 0x1d7   : > { %1205 = shalt.err (!%p1202_p6)
}
 0x1d8   : > { %s1206_s6 = scalar_lea.hbm %s1473_s30, 1024  ;;  %s1210_s14 = scalar_lea.hbm %s1528_s4, 2048 }
 0x1d9   : > { %p1207_p7 = scmp.ne.s32.totalorder %s1473_s30, %s1206_s6  ;;  %p1211_p11 = scmp.lt.s32.totalorder %s1473_s30, %s1528_s4 }
 0x1da   : > { %p1212_p12 = scmp.lt.s32.totalorder %s1210_s14, %s1206_s6 }
 0x1db   : > { %p1208_p9 = pnand %p1207_p7, %p1347_p4 }
 0x1dc   : > { %p1213_p13 = por %p1212_p12, %p1211_p11 }
 0x1dd   : > { %p1209_p10 = pneg %p1208_p9 }
 0x1df   : > { %p1214_p0 = pnand %p1213_p13, %p1209_p10 }
 0x1e1   : > { %1217 = shalt.err (!%p1214_p0)
}
 0x1e2   : > { %1102 = dma.vmem_to_hbm [thread:$0]  (%p1347_p4), %s1475_s10, 1024, %s1473_s30, %s803_s7, %s1279_s8, %s1279_s8, %s1280_s9  }
 0x1e3 PF: > { %p1112_p1 = scmp.ge.s32.totalorder %s1274_s20, 2  ;;  %s851_s11 = sand.u32 1, %s1254_s15  }
 0x1e4   : > { %s852_s22 = scalar_lea.sflag [#allocation4], %s851_s11 }
 0x1e5   : > { %p1106_p2 = pnand %p1112_p1, %p1354_p8 }
 0x1e7   : > { %p1107_p3 = pneg %p1106_p2 }
 0x1e9   : > { %1245 = dma.done.wait (%p1107_p3), %s852_s22, 1024  }
 0x1ea   : > { %1247 = vsyncadd (%p1107_p3), %s852_s22, 4294966272  ;;  %s861_s5 = scalar_lea.sflag [#allocation6], %s851_s11 }
 0x1eb   : > { %1249 = dma.done.wait (%p1107_p3), %s861_s5, 1024  }
 0x1ec   : > { %1251 = vsyncadd (%p1107_p3), %s861_s5, 4294966272  ;;  %s21_s20 = sadd.s32 1, %s1274_s20   ;;  %s1531_s15 = smov %s1258_s16 }
 0x1ed   : > { %p18_p5 = scmp.ge.s32.totalorder %s21_s20, 4   ;;  %s1532_s16 = smov %s1262_s17 }
 0x1ee   : > { %s1533_s17 = smov %s1360_s28  ;;  %s1534_s18 = smov %s1270_s19 }
 0x1ef   : > { %s1535_s19 = smov %s1537_s23  ;;  %20 = sbr.rel (!%p18_p5) target bundleno = 6 (0x6), region = 141 }
 0x1f4   :  { %866 = vsyncpa [#allocation4], 1 }
 0x1f5   :  { %868 = vsyncpa [#allocation4 + $0x1], 1 }
 0x1f6   :  { %869 = vsyncpa [#allocation6], 1 }
 0x1f7   :  { %871 = vsyncpa [#allocation6 + $0x1], 1 }

</bundles_post_ra>
